<compile_context>
chip_gen: v5e
topology: v5e:2x2
jax: 0.10.0
libtpu: 0.0.40
codegen_flags: <defaults>
</compile_context>

<pallas_src>
import numpy as np
import jax
import jax.numpy as jnp
from jax import lax
from jax.experimental import pallas as pl
from jax.experimental.pallas import tpu as pltpu


# ----------------------------------------------------------------------------
# Static model description (matches the PyTorch module).
# ----------------------------------------------------------------------------
# (param name, vocab size, embedding dim) in the torch.cat order.
_FEATURES = [
    ("user_emb", 10, 8),
    ("product_emb", 12, 8),
    ("model_emb", 7, 8),
    ("gender_emb", 2, 2),
    ("age_emb", 5, 4),
    ("residence_emb", 3, 3),
    ("color_emb", 6, 4),      # 색상
    ("size_emb", 5, 3),       # 사이즈
    ("material_emb", 4, 5),   # 소재
]
_NUM_CAT = len(_FEATURES)                              # 9
_NUM_COLS = _NUM_CAT + 1                               # 10 raw input columns
_TOTAL_VOCAB = sum(n for _, n, _ in _FEATURES)         # 54
_TOTAL_EMB_DIM = sum(d for _, _, d in _FEATURES)       # 45
_D = _TOTAL_EMB_DIM + 1                                # 46 (+ time)
_H = 64                                                # hidden width

_C_PAD = 64                     # design rows: 54 one-hot + time + ones + 8 pad
_TIME_ROW = _TOTAL_VOCAB        # 54
_ONES_ROW = _TOTAL_VOCAB + 1    # 55


def _build_static_constants():
    """Static selection constants, passed to the kernel as VMEM operands.

    sel (C_PAD, 10): sel[c, f] = 1 selects raw input column f for design row c.
    loc (C_PAD, 1) : local (within-vocab) index each one-hot row must match.
                     Row 55 has sel == 0 and loc == 0, so floor(0) == 0 makes it
                     a constant-one row (carries b1) with zero extra VPU work.
                     Rows 54 and 56..63 use loc = -1 (< 0), which both disables
                     their one-hot and marks them for the time/zero override.
    """
    sel = np.zeros((_C_PAD, _NUM_COLS), np.float32)
    loc = np.full((_C_PAD, 1), -1.0, np.float32)
    c = 0
    for f, (_, n, _) in enumerate(_FEATURES):
        for j in range(n):
            sel[c, f] = 1.0
            loc[c, 0] = float(j)
            c += 1
    sel[_TIME_ROW, _NUM_CAT] = 1.0     # design row 54 <- raw time column (col 9)
    loc[_ONES_ROW, 0] = 0.0            # design row 55 -> constant 1 (bias row)
    return sel, loc


_SEL_NP, _LOC_NP = _build_static_constants()


def _round_up(x, m):
    return ((x + m - 1) // m) * m


def _pick_batch_tile(b_pad):
    """Largest lane-aligned batch tile (<= 2048) dividing the padded batch.

    Keeps at least 2 grid steps when the batch allows it so the "parallel"
    batch axis can be sharded across v7x's two TensorCores (a single step on
    v5e/v6e is unaffected).  TB is capped at 2048 so double-buffered blocks +
    intermediates stay far below even the v5e default scoped-VMEM limit.
    """
    tb = 128
    for cand in (2048, 1024, 512, 256, 128):
        if b_pad % cand == 0:
            tb = cand
            break
    if b_pad == tb and tb > 128:
        tb //= 2
    return tb


# ----------------------------------------------------------------------------
# Pallas kernel: fused one-hot build + Linear + ReLU + (H->1) reduce + sigmoid.
# Compute runs batch-on-LANES so every intermediate and the output block are
# lane-dense; the input block stays in its native row-major layout and is
# transposed implicitly by the first (tiny) MXU matmul.
# ----------------------------------------------------------------------------
def _fused_deeprec_kernel(x_ref, sel_ref, loc_ref, m_ref, w2_ref, b2_ref, o_ref):
    xb = x_ref[...]                                    # (TB, 10) native layout
    # g[c, b] = x[b, col(c)]: row gather onto design rows via a transposing MXU
    # matmul (contract the 10-wide feature dim of both operands).
    g = lax.dot_general(
        sel_ref[...], xb,
        dimension_numbers=(((1,), (1,)), ((), ())),
        preferred_element_type=jnp.float32)            # (64, TB), batch on lanes
    # One-hot rows: floor matches torch .long() for the (non-negative, in-range)
    # indices the module expects; out-of-vocab indices yield an all-zero row.
    onehot = (jnp.floor(g) == loc_ref[...]).astype(jnp.float32)
    # Rows with loc < 0 carry the raw gathered value instead of a one-hot:
    # row 54 -> time, rows 56..63 -> 0 (their fused-weight columns are zero).
    z = jnp.where(loc_ref[...] < 0.0, g, onehot)       # (64, TB) design matrix
    # First Linear: embedding tables, time weight and b1 are pre-folded into
    # m_ref, so one (64, 64) x (64, TB) matmul does lookup + concat + Linear.
    h = jnp.dot(m_ref[...], z, preferred_element_type=jnp.float32)   # (64, TB)
    h = jnp.maximum(h, 0.0)                                           # ReLU
    # TODO(synk): nn.Dropout(0.2) is an inference-time identity; omitted.
    # Second Linear (64 -> 1): VPU multiply + cross-sublane (XLU) reduce keeps
    # the 1-wide projection off the MXU; b2 comes from SMEM as a scalar.
    logit = jnp.sum(h * w2_ref[...], axis=0, keepdims=True) + b2_ref[0]
    o_ref[...] = jax.nn.sigmoid(logit)                                # (1, TB)


def _fused_forward_call(x_pad, sel, loc, m_t, w2, b2, *, tb):
    b_pad, n_cols = x_pad.shape
    return pl.pallas_call(
        _fused_deeprec_kernel,
        out_shape=jax.ShapeDtypeStruct((1, b_pad), jnp.float32),
        grid=(b_pad // tb,),
        in_specs=[
            # Activations: native (B, 10) layout, tiled over the batch only.
            pl.BlockSpec((tb, n_cols), lambda i: (i, 0)),
            # Constants / fused weights: constant index_map -> VMEM-resident.
            pl.BlockSpec((_C_PAD, n_cols), lambda i: (0, 0)),   # sel
            pl.BlockSpec((_C_PAD, 1), lambda i: (0, 0)),        # loc
            pl.BlockSpec((_H, _C_PAD), lambda i: (0, 0)),       # fused W1 (64, 64)
            pl.BlockSpec((_H, 1), lambda i: (0, 0)),            # w2 column
            # b2: single scalar -> SMEM (no padded VMEM tile / DMA).
            pl.BlockSpec(memory_space=pltpu.MemorySpace.SMEM),
        ],
        out_specs=pl.BlockSpec((1, tb), lambda i: (0, i)),       # lane-dense
        compiler_params=pltpu.CompilerParams(
            dimension_semantics=("parallel",),   # megacore on v7x; harmless elsewhere
        ),
    )(x_pad, sel, loc, m_t, w2, b2)


# ----------------------------------------------------------------------------
# Parameters (same shapes/semantics as the PyTorch module) + one-time fusion.
# ----------------------------------------------------------------------------
def init_params(key):
    keys = jax.random.split(key, len(_FEATURES) + 4)
    params = {}
    for (name, n, d), k in zip(_FEATURES, keys[: len(_FEATURES)]):
        params[name] = jax.random.normal(k, (n, d), dtype=jnp.float32) * 0.1
    k_w1, k_b1, k_w2, k_b2 = keys[len(_FEATURES):]
    # Stored as (in, out) so y = x @ W + b  (transpose of nn.Linear storage).
    params["w1"] = jax.random.normal(k_w1, (_D, _H), jnp.float32) * 0.1
    params["b1"] = jax.random.normal(k_b1, (1, _H), jnp.float32) * 0.1
    params["w2"] = jax.random.normal(k_w2, (_H, 1), jnp.float32) * 0.1
    params["b2"] = jax.random.normal(k_b2, (1, 1), jnp.float32) * 0.1
    return params


def fuse_params(params):
    """One-time precompute: fold embedding tables, time weight and b1 into one
    (C_PAD, H) matrix so the kernel's design-matrix matmul does everything.

    Exact rewrite:  feats @ W1 + b1
                 == sum_f onehot(idx_f) @ (E_f @ W1_f) + time * W1_time + 1 * b1
    """
    w1 = params["w1"]                                            # (46, 64)
    rows = []
    off = 0
    for name, _, d in _FEATURES:
        rows.append(jnp.dot(params[name], w1[off:off + d, :]))   # (n_f, 64)
        off += d
    m_aug = jnp.concatenate(
        rows
        + [w1[off:off + 1, :],                                   # row 54: time weight
           params["b1"],                                         # row 55: bias row
           jnp.zeros((_C_PAD - _ONES_ROW - 1, _H), jnp.float32)],  # rows 56..63
        axis=0)                                                  # (C_PAD, H)
    return {
        "m_t": jnp.transpose(m_aug),                             # (H, C_PAD) = (64, 64)
        "w2": params["w2"],                                      # (64, 1)
        "b2": params["b2"].reshape((1,)),                        # (1,) scalar for SMEM
    }


@jax.jit
def deep_rec_forward(fused, x):
    """x: (B, 10) float32 row-major -> (B,) sigmoid scores (torch .squeeze())."""
    B = x.shape[0]
    x = x.astype(jnp.float32)
    b_pad = _round_up(B, 128)
    tb = _pick_batch_tile(b_pad)
    if b_pad != B:
        # Pad the batch only (no column pad / no transpose): zero rows are valid
        # index-0 rows, their outputs are sliced away below.
        x = jnp.pad(x, ((0, b_pad - B), (0, 0)))
    sel = jnp.asarray(_SEL_NP)
    loc = jnp.asarray(_LOC_NP)
    out = _fused_forward_call(x, sel, loc, fused["m_t"], fused["w2"], fused["b2"],
                              tb=tb)
    return out[0, :B]


# ----------------------------------------------------------------------------
# Pure-JAX reference (mirrors the PyTorch forward) for a correctness check.
# ----------------------------------------------------------------------------
def reference_forward(params, x):
    idx = x[:, :_NUM_CAT].astype(jnp.int32)
    time = x[:, _NUM_CAT:_NUM_CAT + 1]
    pieces = [
        jnp.take(params[name], idx[:, f], axis=0)
        for f, (name, _, _) in enumerate(_FEATURES)
    ]
    feats = jnp.concatenate(pieces + [time], axis=-1)            # (B, 46)
    h = jnp.maximum(feats @ params["w1"] + params["b1"], 0.0)
    logit = h @ params["w2"] + params["b2"]
    return jax.nn.sigmoid(logit)[:, 0]


if __name__ == "__main__":
    key = jax.random.PRNGKey(0)
    k_params, k_ids, k_time = jax.random.split(key, 3)

    params = init_params(k_params)
    fused = fuse_params(params)

    B = 8
    id_keys = jax.random.split(k_ids, _NUM_CAT)
    id_cols = [
        jax.random.randint(id_keys[f], (B,), 0, n).astype(jnp.float32)
        for f, (_, n, _) in enumerate(_FEATURES)
    ]
    time_col = jax.random.uniform(k_time, (B,), dtype=jnp.float32)
    x = jnp.stack(id_cols + [time_col], axis=1)                  # (B, 10) float32

    y = deep_rec_forward(fused, x)
    jax.block_until_ready(y)

    # Sanity: shape, range, and agreement with the un-fused pure-JAX reference.
    y_ref = reference_forward(params, x)
    assert y.shape == (B,)
    assert bool(jnp.all((y > 0.0) & (y < 1.0)))
    assert bool(jnp.allclose(y, y_ref, atol=2e-4, rtol=2e-4)), (y, y_ref)
    print("KERNEL_OK")
</pallas_src>

<mosaic_0001>
module attributes {stable_mosaic.version = 11 : i64} {
  func.func @_fused_deeprec_kernel(%arg0: i32, %arg1: memref<128x10xf32, #tpu.memory_space<vmem>>, %arg2: memref<64x10xf32, #tpu.memory_space<vmem>>, %arg3: memref<64x1xf32, #tpu.memory_space<vmem>>, %arg4: memref<64x64xf32, #tpu.memory_space<vmem>>, %arg5: memref<64x1xf32, #tpu.memory_space<vmem>>, %arg6: memref<1xf32, #tpu.memory_space<smem>>, %arg7: memref<1x128xf32, #tpu.memory_space<vmem>>) attributes {dimension_semantics = [#tpu.dimension_semantics<parallel>], iteration_bounds = array<i64: 1>, scalar_prefetch = 0 : i64, scratch_operands = 0 : i64, tpu.core_type = #tpu.core_type<tc>, window_params = [{transform_indices = @transform_0, window_bounds = array<i64: 128, 10>}, {pipeline_mode = #tpu.pipeline_mode<synchronous>, transform_indices = @transform_1, window_bounds = array<i64: 64, 10>}, {pipeline_mode = #tpu.pipeline_mode<synchronous>, transform_indices = @transform_2, window_bounds = array<i64: 64, 1>}, {pipeline_mode = #tpu.pipeline_mode<synchronous>, transform_indices = @transform_3, window_bounds = array<i64: 64, 64>}, {pipeline_mode = #tpu.pipeline_mode<synchronous>, transform_indices = @transform_4, window_bounds = array<i64: 64, 1>}, {transform_indices = @transform_5, window_bounds = array<i64: 1>}, {transform_indices = @transform_6, window_bounds = array<i64: 1, 128>}]} {
    %c0 = arith.constant 0 : index
    %c0_0 = arith.constant 0 : index
    %0 = vector.load %arg1[%c0, %c0_0] : memref<128x10xf32, #tpu.memory_space<vmem>>, vector<128x10xf32>
    %c0_1 = arith.constant 0 : index
    %c0_2 = arith.constant 0 : index
    %1 = vector.load %arg2[%c0_1, %c0_2] : memref<64x10xf32, #tpu.memory_space<vmem>>, vector<64x10xf32>
    %cst = arith.constant dense<0.000000e+00> : vector<64x128xf32>
    %2 = tpu.matmul %1, %0, %cst {dimension_numbers = #tpu.dot_dimension_numbers<[1], [1], [0], [0], [0, 0, 1, 0], [], []>} : vector<64x10xf32>, vector<128x10xf32>, vector<64x128xf32> -> vector<64x128xf32>
    %3 = math.floor %2 : vector<64x128xf32>
    %c0_3 = arith.constant 0 : index
    %c0_4 = arith.constant 0 : index
    %4 = vector.load %arg3[%c0_3, %c0_4] : memref<64x1xf32, #tpu.memory_space<vmem>>, vector<64x1xf32>
    %5 = vector.broadcast %4 : vector<64x1xf32> to vector<64x128xf32>
    %6 = arith.cmpf oeq, %3, %5 : vector<64x128xf32>
    %7 = arith.extui %6 : vector<64x128xi1> to vector<64x128xi32>
    %8 = arith.sitofp %7 : vector<64x128xi32> to vector<64x128xf32>
    %c0_5 = arith.constant 0 : index
    %c0_6 = arith.constant 0 : index
    %9 = vector.load %arg3[%c0_5, %c0_6] : memref<64x1xf32, #tpu.memory_space<vmem>>, vector<64x1xf32>
    %cst_7 = arith.constant 0.000000e+00 : f32
    %10 = vector.broadcast %cst_7 : f32 to vector<64x1xf32>
    %11 = arith.cmpf olt, %9, %10 : vector<64x1xf32>
    %12 = vector.shape_cast %11 : vector<64x1xi1> to vector<64x1xi1>
    %13 = vector.broadcast %12 : vector<64x1xi1> to vector<64x128xi1>
    %14 = arith.select %13, %2, %8 : vector<64x128xi1>, vector<64x128xf32>
    %c0_8 = arith.constant 0 : index
    %c0_9 = arith.constant 0 : index
    %15 = vector.load %arg4[%c0_8, %c0_9] : memref<64x64xf32, #tpu.memory_space<vmem>>, vector<64x64xf32>
    %cst_10 = arith.constant dense<0.000000e+00> : vector<64x128xf32>
    %16 = tpu.matmul %15, %14, %cst_10 {dimension_numbers = #tpu.dot_dimension_numbers<[1], [0], [0], [1], [0, 0, 1, 1], [], []>} : vector<64x64xf32>, vector<64x128xf32>, vector<64x128xf32> -> vector<64x128xf32>
    %cst_11 = arith.constant 0.000000e+00 : f32
    %17 = vector.broadcast %cst_11 : f32 to vector<64x128xf32>
    %18 = arith.maximumf %16, %17 : vector<64x128xf32>
    %c0_12 = arith.constant 0 : index
    %c0_13 = arith.constant 0 : index
    %19 = vector.load %arg5[%c0_12, %c0_13] : memref<64x1xf32, #tpu.memory_space<vmem>>, vector<64x1xf32>
    %20 = vector.broadcast %19 : vector<64x1xf32> to vector<64x128xf32>
    %21 = arith.mulf %18, %20 : vector<64x128xf32>
    %cst_14 = arith.constant dense<0.000000e+00> : vector<128xf32>
    %22 = vector.multi_reduction <add>, %21, %cst_14 [0] : vector<64x128xf32> to vector<128xf32>
    %23 = vector.shape_cast %22 : vector<128xf32> to vector<1x128xf32>
    %c0_15 = arith.constant 0 : index
    %24 = memref.load %arg6[%c0_15] : memref<1xf32, #tpu.memory_space<smem>>
    %25 = vector.broadcast %24 : f32 to vector<1x128xf32>
    %26 = arith.addf %23, %25 : vector<1x128xf32>
    %27 = arith.negf %26 : vector<1x128xf32>
    %28 = math.exp %27 : vector<1x128xf32>
    %cst_16 = arith.constant 1.000000e+00 : f32
    %29 = vector.broadcast %cst_16 : f32 to vector<1x128xf32>
    %30 = arith.addf %29, %28 : vector<1x128xf32>
    %31 = arith.divf %29, %30 : vector<1x128xf32>
    %c0_17 = arith.constant 0 : index
    %c0_18 = arith.constant 0 : index
    %32 = vector.load %arg7[%c0_17, %c0_18] : memref<1x128xf32, #tpu.memory_space<vmem>>, vector<1x128xf32>
    tpu.vector_store %arg7[%c0_17, %c0_18], %31 {strides = array<i32>} : memref<1x128xf32, #tpu.memory_space<vmem>>, vector<1x128xf32>,
    return
  }
  func.func @transform_0(%arg0: i32) -> (i32, i32) {
    %c0_i32 = arith.constant 0 : i32
    %c0_i32_0 = arith.constant 0 : i32
    return %arg0, %c0_i32 : i32, i32
  }
  func.func @transform_1(%arg0: i32) -> (i32, i32) {
    %c0_i32 = arith.constant 0 : i32
    %c0_i32_0 = arith.constant 0 : i32
    %c0_i32_1 = arith.constant 0 : i32
    return %c0_i32, %c0_i32_0 : i32, i32
  }
  func.func @transform_2(%arg0: i32) -> (i32, i32) {
    %c0_i32 = arith.constant 0 : i32
    %c0_i32_0 = arith.constant 0 : i32
    %c0_i32_1 = arith.constant 0 : i32
    return %c0_i32, %c0_i32_0 : i32, i32
  }
  func.func @transform_3(%arg0: i32) -> (i32, i32) {
    %c0_i32 = arith.constant 0 : i32
    %c0_i32_0 = arith.constant 0 : i32
    %c0_i32_1 = arith.constant 0 : i32
    return %c0_i32, %c0_i32_0 : i32, i32
  }
  func.func @transform_4(%arg0: i32) -> (i32, i32) {
    %c0_i32 = arith.constant 0 : i32
    %c0_i32_0 = arith.constant 0 : i32
    %c0_i32_1 = arith.constant 0 : i32
    return %c0_i32, %c0_i32_0 : i32, i32
  }
  func.func @transform_5(%arg0: i32) -> i32 {
    %c0_i32 = arith.constant 0 : i32
    %c0_i32_0 = arith.constant 0 : i32
    return %c0_i32 : i32
  }
  func.func @transform_6(%arg0: i32) -> (i32, i32) {
    %c0_i32 = arith.constant 0 : i32
    %c0_i32_0 = arith.constant 0 : i32
    return %c0_i32, %arg0 : i32, i32
  }
}

</mosaic_0001>

<bundles_post_ra>
// kernel: deep_rec_forward.1
= control target key start
LH: loop header
LB: loop body
LE: loop exit
PB: predicated region body
PF: predicated region fallthrough
CT: control target
= control target key end

     0   :  { %vm48_vm0 = vcmask 80896   ;;  %v558_v1 = vmov 0   ;;  %s824_s0 = inlined_call_operand.vmem [shape: f32[128,10], index: 0, kind: input, shape index: {}]   ;;  %s825_s2 = inlined_call_operand.vmem [shape: f32[64,1], index: 2, kind: input, shape index: {}]   ;;  %s826_s4 = inlined_call_operand.vmem [shape: f32[64,1], index: 4, kind: input, shape index: {}]   ;;  %s827_s1 = inlined_call_operand.vmem [shape: f32[64,10], index: 1, kind: input, shape index: {}]   ;;  %s828_s3 = inlined_call_operand.vmem [shape: f32[64,64], index: 3, kind: input, shape index: {}]   ;;  %s829_s5 = inlined_call_operand.<no memory space> [shape: f32[1], index: 5, kind: input, shape index: {}]   ;;  %s830_s6 = inlined_call_operand.vmem [shape: f32[1,128], index: 6, kind: output, shape index: {}]  }
   0x1   :  { %v39_v0 = vld [vmem:[%s824_s0 + $0x78] sm:$0xff]  ;;  %551 = vset.pattern.permute.xlu0 %v558_v1  ;;  %552 = vset.pattern.permute.xlu1 %v558_v1  ;;  %v38_v3 = vld [vmem:[%s824_s0 + $0x70] sm:$0xff]  ;;  %v37_v5 = vld [vmem:[%s824_s0 + $0x68] sm:$0xff] }
   0x2   :  { %476 = vmatpush.xpose.msk.msra.mxu0 %vm48_vm0, %v39_v0  ;;  %517 = vmatpush.xpose.msk.msra.mxu2 %vm48_vm0, %v39_v0  ;;  %v177_v2 = vld [vmem:[%s825_s2 + $0x38] sm:$0xff]  ;;  %v176_v4 = vld [vmem:[%s825_s2 + $0x30] sm:$0xff]  ;;  %v36_v8 = vld [vmem:[%s824_s0 + $0x60] sm:$0xff] }
   0x3   :  { %518 = vmatpush.xpose.msk.msra.mxu3 %vm48_vm0, %v39_v0  ;;  %215 = vperm.xlu0 %551, %v177_v2   ;;  %vm249_vm1 = vcmp.lt.f32.partialorder %v177_v2, 0.0  ;;  %vm248_vm2 = vcmp.lt.f32.partialorder %v176_v4, 0.0  ;;  %v174_v9 = vld [vmem:[%s825_s2 + $0x20] sm:$0xff]  ;;  %v35_v10 = vld [vmem:[%s824_s0 + $0x58] sm:$0xff]  ;;  %v175_v11 = vld [vmem:[%s825_s2 + $0x28] sm:$0xff] }
   0x4   :  { %210 = vperm.xlu1 %552, %v176_v4   ;;  %553 = vset.pattern.permute.xlu2 %v558_v1  ;;  %v257_v6 = vsel %vm249_vm1, 1, %v558_v1  ;;  %v256_v7 = vsel %vm248_vm2, 1, %v558_v1  ;;  %vm246_vm3 = vcmp.lt.f32.partialorder %v174_v9, 0.0  ;;  %v173_v13 = vld [vmem:[%s825_s2 + $0x18] sm:$0xff]  ;;  %v34_v14 = vld [vmem:[%s824_s0 + $0x50] sm:$0xff]  ;;  %vm247_vm4 = vcmp.lt.f32.partialorder %v175_v11, 0.0 }
   0x5   :  { %205 = vperm.xlu2 %553, %v175_v11   ;;  %v254_v12 = vsel %vm246_vm3, 1, %v558_v1  ;;  %vm245_vm5 = vcmp.lt.f32.partialorder %v173_v13, 0.0  ;;  %v33_v15 = vld [vmem:[%s824_s0 + $0x48] sm:$0xff]  ;;  %v255_v16 = vsel %vm247_vm4, 1, %v558_v1  ;;  %v172_v18 = vld [vmem:[%s825_s2 + $0x10] sm:$0xff]  ;;  %v32_v19 = vld [vmem:[%s824_s0 + $0x40] sm:$0xff] }
   0x6   :  { %477 = vmatpush.xpose.msk.msra.mxu0 %vm48_vm0, %v38_v3  ;;  %519 = vmatpush.xpose.msk.msra.mxu2 %vm48_vm0, %v38_v3  ;;  %v253_v17 = vsel %vm245_vm5, 1, %v558_v1  ;;  %v171_v20 = vld [vmem:[%s825_s2 + $0x8] sm:$0xff]  ;;  %v31_v21 = vld [vmem:[%s824_s0 + $0x38] sm:$0xff]  ;;  %v170_v23 = vld [vmem:[%s825_s2] sm:$0xff]  ;;  %vm244_vm8 = vcmp.lt.f32.partialorder %v172_v18, 0.0 }
   0x7   :  { %520 = vmatpush.xpose.msk.msra.mxu3 %vm48_vm0, %v38_v3  ;;  %vm243_vm6 = vcmp.lt.f32.partialorder %v171_v20, 0.0  ;;  %v30_v24 = vld [vmem:[%s824_s0 + $0x30] sm:$0xff]  ;;  %vm242_vm7 = vcmp.lt.f32.partialorder %v170_v23, 0.0  ;;  %v29_v25 = vld [vmem:[%s824_s0 + $0x28] sm:$0xff]  ;;  %v380_v27 = vld [vmem:[%s826_s4] sm:$0xff]  ;;  %v252_v28 = vsel %vm244_vm8, 1, %v558_v1 }
   0x8   :  { %v251_v22 = vsel %vm243_vm6, 1, %v558_v1  ;;  %v250_v26 = vsel %vm242_vm7, 1, %v558_v1  ;;  %v28_v29 = vld [vmem:[%s824_s0 + $0x20] sm:$0xff]  ;;  %v27_v30 = vld [vmem:[%s824_s0 + $0x18] sm:$0xff]  ;;  %v382_v31 = vld [vmem:[%s826_s4 + $0x10] sm:$0xff] }
   0x9   :  { %v383_v32 = vld [vmem:[%s826_s4 + $0x18] sm:$0xff]  ;;  %v26_v33 = vld [vmem:[%s824_s0 + $0x10] sm:$0xff]  ;;  %v25_v34 = vld [vmem:[%s824_s0 + $0x8] sm:$0xff] }
   0xa   :  { %478 = vmatpush.xpose.msk.msra.mxu0 %vm48_vm0, %v37_v5  ;;  %521 = vmatpush.xpose.msk.msra.mxu2 %vm48_vm0, %v37_v5  ;;  %v385_v35 = vld [vmem:[%s826_s4 + $0x28] sm:$0xff]  ;;  %v386_v36 = vld [vmem:[%s826_s4 + $0x30] sm:$0xff]  ;;  %v24_v38 = vld [vmem:[%s824_s0] sm:$0xff] }
   0xb   :  { %522 = vmatpush.xpose.msk.msra.mxu3 %vm48_vm0, %v37_v5  ;;  %280 = vperm.xlu0 %551, %v257_v6   ;;  %v381_v37 = vld [vmem:[%s826_s4 + $0x8] sm:$0xff]  ;;  %v40_v39 = vld [vmem:[%s827_s1] sm:$0xff]  ;;  %v42_v40 = vld [vmem:[%s827_s1 + $0x10] sm:$0xff] }
   0xc   :  { %277 = vperm.xlu1 %552, %v256_v7   ;;  %v45_v41 = vld [vmem:[%s827_s1 + $0x28] sm:$0xff]  ;;  %v384_v42 = vld [vmem:[%s826_s4 + $0x20] sm:$0xff]  ;;  %v43_v44 = vld [vmem:[%s827_s1 + $0x18] sm:$0xff] }
   0xd   :  { %274 = vperm.xlu2 %553, %v255_v16   ;;  %v41_v43 = vld [vmem:[%s827_s1 + $0x8] sm:$0xff]  ;;  %v46_v45 = vld [vmem:[%s827_s1 + $0x30] sm:$0xff]  ;;  %v387_v46 = vld [vmem:[%s826_s4 + $0x38] sm:$0xff] }
   0xe   :  { %479 = vmatpush.xpose.msk.msra.mxu0 %vm48_vm0, %v36_v8  ;;  %523 = vmatpush.xpose.msk.msra.mxu2 %vm48_vm0, %v36_v8  ;;  %v44_v47 = vld [vmem:[%s827_s1 + $0x20] sm:$0xff]  ;;  %v47_v48 = vld [vmem:[%s827_s1 + $0x38] sm:$0xff] }
   0xf   :  { %524 = vmatpush.xpose.msk.msra.mxu3 %vm48_vm0, %v36_v8 }
  0x12   :  { %480 = vmatpush.xpose.msk.msra.mxu0 %vm48_vm0, %v35_v10  ;;  %525 = vmatpush.xpose.msk.msra.mxu2 %vm48_vm0, %v35_v10 }
  0x13   :  { %526 = vmatpush.xpose.msk.msra.mxu3 %vm48_vm0, %v35_v10  ;;  %200 = vperm.xlu0 %551, %v174_v9   ;;  %v559_v9 = vmov 0.0  }
  0x14   :  { %271 = vperm.xlu1 %552, %v254_v12  }
  0x15   :  { %195 = vperm.xlu2 %553, %v173_v13  }
  0x16   :  { %481 = vmatpush.xpose.msk.msra.mxu0 %vm48_vm0, %v34_v14  ;;  %527 = vmatpush.xpose.msk.msra.mxu2 %vm48_vm0, %v34_v14 }
  0x17   :  { %528 = vmatpush.xpose.msk.msra.mxu3 %vm48_vm0, %v34_v14 }
  0x1a   :  { %482 = vmatpush.xpose.msk.msra.mxu0 %vm48_vm0, %v33_v15  ;;  %529 = vmatpush.xpose.msk.msra.mxu2 %vm48_vm0, %v33_v15 }
  0x1b   :  { %530 = vmatpush.xpose.msk.msra.mxu3 %vm48_vm0, %v33_v15  ;;  %268 = vperm.xlu0 %551, %v253_v17  }
  0x1c   :  { %190 = vperm.xlu1 %552, %v172_v18  }
  0x1d   :  { %265 = vperm.xlu2 %553, %v252_v28  }
  0x1e   :  { %483 = vmatpush.xpose.msk.msra.mxu0 %vm48_vm0, %v32_v19  ;;  %531 = vmatpush.xpose.msk.msra.mxu2 %vm48_vm0, %v32_v19 }
  0x1f   :  { %532 = vmatpush.xpose.msk.msra.mxu3 %vm48_vm0, %v32_v19 }
  0x22   :  { %484 = vmatpush.xpose.msk.msra.mxu0 %vm48_vm0, %v31_v21  ;;  %533 = vmatpush.xpose.msk.msra.mxu2 %vm48_vm0, %v31_v21 }
  0x23   :  { %534 = vmatpush.xpose.msk.msra.mxu3 %vm48_vm0, %v31_v21  ;;  %185 = vperm.xlu0 %551, %v171_v20  }
  0x24   :  { %262 = vperm.xlu1 %552, %v251_v22  }
  0x25   :  { %180 = vperm.xlu2 %553, %v170_v23  }
  0x26   :  { %485 = vmatpush.xpose.msk.msra.mxu0 %vm48_vm0, %v30_v24  ;;  %535 = vmatpush.xpose.msk.msra.mxu2 %vm48_vm0, %v30_v24 }
  0x27   :  { %536 = vmatpush.xpose.msk.msra.mxu3 %vm48_vm0, %v30_v24 }
  0x2a   :  { %486 = vmatpush.xpose.msk.msra.mxu0 %vm48_vm0, %v29_v25  ;;  %537 = vmatpush.xpose.msk.msra.mxu2 %vm48_vm0, %v29_v25 }
  0x2b   :  { %538 = vmatpush.xpose.msk.msra.mxu3 %vm48_vm0, %v29_v25  ;;  %259 = vperm.xlu0 %551, %v250_v26  }
  0x2c   :  { %390 = vperm.xlu1 %552, %v380_v27  }
  0x2d   :  { %395 = vperm.xlu2 %553, %v381_v37   ;;  %v301_v37 = vld [vmem:[%s828_s3 + $0x18] sm:$0xff] }
  0x2e   :  { %487 = vmatpush.xpose.msk.msra.mxu0 %vm48_vm0, %v28_v29  ;;  %539 = vmatpush.xpose.msk.msra.mxu2 %vm48_vm0, %v28_v29 }
  0x2f   :  { %540 = vmatpush.xpose.msk.msra.mxu3 %vm48_vm0, %v28_v29 }
  0x32   :  { %488 = vmatpush.xpose.msk.msra.mxu0 %vm48_vm0, %v27_v30  ;;  %541 = vmatpush.xpose.msk.msra.mxu2 %vm48_vm0, %v27_v30 }
  0x33   :  { %542 = vmatpush.xpose.msk.msra.mxu3 %vm48_vm0, %v27_v30  ;;  %400 = vperm.xlu0 %551, %v382_v31  }
  0x34   :  { %405 = vperm.xlu1 %552, %v383_v32  }
  0x35   :  { %410 = vperm.xlu2 %553, %v384_v42  }
  0x36   :  { %489 = vmatpush.xpose.msk.msra.mxu0 %vm48_vm0, %v26_v33  ;;  %543 = vmatpush.xpose.msk.msra.mxu2 %vm48_vm0, %v26_v33 }
  0x37   :  { %544 = vmatpush.xpose.msk.msra.mxu3 %vm48_vm0, %v26_v33  ;;  %v298_v33 = vld [vmem:[%s828_s3] sm:$0xff] }
  0x3a   :  { %490 = vmatpush.xpose.msk.msra.mxu0 %vm48_vm0, %v25_v34  ;;  %545 = vmatpush.xpose.msk.msra.mxu2 %vm48_vm0, %v25_v34 }
  0x3b   :  { %546 = vmatpush.xpose.msk.msra.mxu3 %vm48_vm0, %v25_v34  ;;  %415 = vperm.xlu0 %551, %v385_v35   ;;  %v299_v35 = vld [vmem:[%s828_s3 + $0x8] sm:$0xff] }
  0x3c   :  { %420 = vperm.xlu1 %552, %v386_v36   ;;  %v300_v36 = vld [vmem:[%s828_s3 + $0x10] sm:$0xff] }
  0x3d   :  { %425 = vperm.xlu2 %553, %v387_v46  }
  0x3e   :  { %491 = vmatpush.xpose.msk.msra.mxu0 %vm48_vm0, %v24_v38  ;;  %547 = vmatpush.xpose.msk.msra.mxu2 %vm48_vm0, %v24_v38 }
  0x3f   :  { %548 = vmatpush.xpose.msk.msra.mxu3 %vm48_vm0, %v24_v38  ;;  %v302_v38 = vld [vmem:[%s828_s3 + $0x20] sm:$0xff] }
  0x41   :  { %492 = vmatmul.msk.f32.vlgmr.msra.gmra.mxu0 %vm48_vm0, %v40_v39  ;;  %494 = vmatmul.msk.f32.vlgmr.msra.gmra.mxu2 %vm48_vm0, %v42_v40  ;;  %v303_v39 = vld [vmem:[%s828_s3 + $0x28] sm:$0xff]  ;;  %v304_v40 = vld [vmem:[%s828_s3 + $0x30] sm:$0xff] }
  0x42   :  { %497 = vmatmul.msk.f32.vlgmr.msra.gmra.mxu3 %vm48_vm0, %v45_v41  ;;  %v305_v41 = vld [vmem:[%s828_s3 + $0x38] sm:$0xff] }
  0x49   :  { %493 = vmatmul.msk.f32.gmra.mxu0 %vm48_vm0, %v41_v43  ;;  %495 = vmatmul.msk.f32.gmra.mxu2 %vm48_vm0, %v43_v44 }
  0x4a   :  { %498 = vmatmul.msk.f32.gmra.mxu3 %vm48_vm0, %v46_v45 }
  0x51   :  { %496 = vmatmul.msk.f32.gmra.mxu2 %vm48_vm0, %v44_v47 }
  0x52   :  { %499 = vmatmul.msk.f32.gmra.mxu3 %vm48_vm0, %v47_v48 }
  0x5f   :  { %v206_v50 = vpop.permute.xlu2 %205 }
  0x67   :  { %v275_v53 = vpop.permute.xlu2 %274 }
  0x68   :  { %vm287_vm0 = vcmp.eq.s32.totalorder %v275_v53, 1 }
  0x6f   :  { %v196_v59 = vpop.permute.xlu2 %195 }
  0x75   :  { %v216_v49 = vpop.permute.xlu0 %215 }
  0x76   :  { %v211_v51 = vpop.permute.xlu1 %210 }
  0x77   :  { %v266_v6 = vpop.permute.xlu2 %265 }
  0x78   :  { %vm284_vm6 = vcmp.eq.s32.totalorder %v266_v6, 1 }
  0x7d   :  { %v281_v52 = vpop.permute.xlu0 %280 }
  0x7e   :  { %v278_v56 = vpop.permute.xlu1 %277  ;;  %vm289_vm12 = vcmp.eq.s32.totalorder %v281_v52, 1 }
  0x7f   :  { %vm288_vm14 = vcmp.eq.s32.totalorder %v278_v56, 1  ;;  %v181_v24 = vpop.permute.xlu2 %180 }
  0x85   :  { %v201_v57 = vpop.permute.xlu0 %200 }
  0x86   :  { %v272_v62 = vpop.permute.xlu1 %271 }
  0x87   :  { %vm286_vm2 = vcmp.eq.s32.totalorder %v272_v62, 1  ;;  %v396_v48 = vpop.permute.xlu2 %395 }
  0x8d   :  { %v269_v63 = vpop.permute.xlu0 %268 }
  0x8e   :  { %v191_v12 = vpop.permute.xlu1 %190  ;;  %vm285_vm4 = vcmp.eq.s32.totalorder %v269_v63, 1 }
  0x95   :  { %v186_v16 = vpop.permute.xlu0 %185 }
  0x96   :  { %v263_v28 = vpop.permute.xlu1 %262 }
  0x97   :  { %vm283_vm7 = vcmp.eq.s32.totalorder %v263_v28, 1 }
  0x9d   :  { %v260_v31 = vpop.permute.xlu0 %259 }
  0x9e   :  { %vm282_vm8 = vcmp.eq.s32.totalorder %v260_v31, 1  ;;  %v391_v47 = vpop.permute.xlu1 %390 }
  0xbe   :  { %v782_v61 = vpop.f32.mrf.mxu0 }
  0xbf   :  { %v162_v20 = vfloor.f32 %v782_v61 }
  0xc1   :  { %vm218_vm5 = vcmp.eq.f32.partialorder %v162_v20, %v181_v24 }
  0xc2   :  { %v500_v30 = vsel %vm218_vm5, 1.0, %v559_v9 }
  0xc3   :  { %v290_v34 = vsel %vm282_vm8, %v782_v61, %v500_v30 }
  0xc4   :  { %v144_v54 = vpop.f32.mrf.mxu2 }
  0xc5   :  { %v153_v55 = vpop.f32.mrf.mxu3  ;;  %v164_v13 = vfloor.f32 %v144_v54 }
  0xc6   :  { %v167_v1 = vfloor.f32 %v153_v55  ;;  %v141_v8 = vpop.f32.mrf.mxu0 }
  0xc7   :  { %v163_v17 = vfloor.f32 %v141_v8  ;;  %vm220_vm1 = vcmp.eq.f32.partialorder %v164_v13, %v191_v12 }
  0xc8   :  { %vm223_vm11 = vcmp.eq.f32.partialorder %v167_v1, %v206_v50  ;;  %v502_v25 = vsel %vm220_vm1, 1.0, %v559_v9 }
  0xc9   :  { %v505_v15 = vsel %vm223_vm11, 1.0, %v559_v9  ;;  %vm219_vm3 = vcmp.eq.f32.partialorder %v163_v17, %v186_v16  ;;  %v292_v29 = vsel %vm284_vm6, %v144_v54, %v502_v25  ;;  %v406_v54 = vpop.permute.xlu1 %405 }
  0xca   :  { %v295_v21 = vsel %vm287_vm0, %v153_v55, %v505_v15  ;;  %v501_v27 = vsel %vm219_vm3, 1.0, %v559_v9 }
  0xcb   :  { %v291_v32 = vsel %vm283_vm7, %v141_v8, %v501_v27 }
  0xcc   :  { %v147_v58 = vpop.f32.mrf.mxu2 }
  0xcd   :  { %v156_v60 = vpop.f32.mrf.mxu3  ;;  %v165_v7 = vfloor.f32 %v147_v58 }
  0xce   :  { %v168_v0 = vfloor.f32 %v156_v60 }
  0xcf   :  { %vm221_vm15 = vcmp.eq.f32.partialorder %v165_v7, %v196_v59 }
  0xd0   :  { %vm224_vm9 = vcmp.eq.f32.partialorder %v168_v0, %v211_v51  ;;  %v503_v22 = vsel %vm221_vm15, 1.0, %v559_v9  ;;  %v401_v51 = vpop.permute.xlu0 %400 }
  0xd1   :  { %v506_v11 = vsel %vm224_vm9, 1.0, %v559_v9  ;;  %v293_v26 = vsel %vm285_vm4, %v147_v58, %v503_v22  ;;  %vm306_vm9 = vcmask 523264   ;;  %v421_v7 = vpop.permute.xlu1 %420  ;;  %v450_v22 = vstv %s829_s5 }
  0xd2   :  { %v296_v18 = vsel %vm288_vm14, %v156_v60, %v506_v11  ;;  %v411_v60 = vpop.permute.xlu2 %410 }
  0xd4   :  { %v150_v2 = vpop.f32.mrf.mxu2 }
  0xd5   :  { %v159_v3 = vpop.f32.mrf.mxu3  ;;  %v166_v4 = vfloor.f32 %v150_v2 }
  0xd6   :  { %v169_v5 = vfloor.f32 %v159_v3 }
  0xd7   :  { %vm222_vm13 = vcmp.eq.f32.partialorder %v166_v4, %v201_v57 }
  0xd8   :  { %vm225_vm10 = vcmp.eq.f32.partialorder %v169_v5, %v216_v49  ;;  %v504_v19 = vsel %vm222_vm13, 1.0, %v559_v9  ;;  %v416_v4 = vpop.permute.xlu0 %415 }
  0xd9   :  { %v507_v10 = vsel %vm225_vm10, 1.0, %v559_v9  ;;  %v294_v23 = vsel %vm286_vm2, %v150_v2, %v504_v19 }
  0xda   :  { %v297_v14 = vsel %vm289_vm12, %v159_v3, %v507_v10  ;;  %v426_v13 = vpop.permute.xlu2 %425 }
  0xdb   :  { %339 = vmatpush.msra.mxu1 %v297_v14 }
  0xdd   :  { %340 = vmatpush.msra.mxu1 %v296_v18 }
  0xdf   :  { %341 = vmatpush.msra.mxu1 %v295_v21 }
  0xe1   :  { %342 = vmatpush.msra.mxu1 %v294_v23 }
  0xe3   :  { %343 = vmatpush.msra.mxu1 %v293_v26 }
  0xe5   :  { %344 = vmatpush.msra.mxu1 %v292_v29 }
  0xe7   :  { %345 = vmatpush.msra.mxu1 %v291_v32 }
  0xe9   :  { %346 = vmatpush.msra.mxu1 %v290_v34 }
  0xea   :  { %508 = vmatmul.msk.f32.vlgmr.msra.gmra.mxu1 %vm306_vm9, %v298_v33 }
  0xf2   :  { %509 = vmatmul.msk.f32.gmra.mxu1 %vm306_vm9, %v299_v35 }
  0xfa   :  { %510 = vmatmul.msk.f32.gmra.mxu1 %vm306_vm9, %v300_v36 }
 0x102   :  { %511 = vmatmul.msk.f32.gmra.mxu1 %vm306_vm9, %v301_v37 }
 0x10a   :  { %512 = vmatmul.msk.f32.gmra.mxu1 %vm306_vm9, %v302_v38 }
 0x112   :  { %513 = vmatmul.msk.f32.gmra.mxu1 %vm306_vm9, %v303_v39 }
 0x11a   :  { %514 = vmatmul.msk.f32.gmra.mxu1 %vm306_vm9, %v304_v40 }
 0x122   :  { %515 = vmatmul.msk.f32.gmra.mxu1 %vm306_vm9, %v305_v41 }
 0x167   :  { %v348_v42 = vpop.f32.mrf.mxu1 }
 0x168   :  { %v372_v52 = vmax.f32 %v348_v42, 0.0 }
 0x16a   :  { %v428_v57 = vmul.f32 %v391_v47, %v372_v52 }
 0x16f   :  { %v351_v43 = vpop.f32.mrf.mxu1 }
 0x170   :  { %v373_v50 = vmax.f32 %v351_v43, 0.0 }
 0x172   :  { %v429_v55 = vmul.f32 %v396_v48, %v373_v50 }
 0x174   :  { %v436_v62 = vadd.f32 %v429_v55, %v428_v57 }
 0x177   :  { %v354_v44 = vpop.f32.mrf.mxu1 }
 0x178   :  { %v374_v53 = vmax.f32 %v354_v44, 0.0 }
 0x17a   :  { %v430_v58 = vmul.f32 %v401_v51, %v374_v53 }
 0x17c   :  { %v437_v1 = vadd.f32 %v436_v62, %v430_v58 }
 0x17f   :  { %v357_v45 = vpop.f32.mrf.mxu1 }
 0x180   :  { %v375_v56 = vmax.f32 %v357_v45, 0.0 }
 0x182   :  { %v431_v63 = vmul.f32 %v406_v54, %v375_v56 }
 0x184   :  { %v438_v5 = vadd.f32 %v437_v1, %v431_v63 }
 0x187   :  { %v360_v46 = vpop.f32.mrf.mxu1 }
 0x188   :  { %v376_v59 = vmax.f32 %v360_v46, 0.0 }
 0x18a   :  { %v432_v2 = vmul.f32 %v411_v60, %v376_v59 }
 0x18c   :  { %v439_v8 = vadd.f32 %v438_v5, %v432_v2 }
 0x18f   :  { %v363_v49 = vpop.f32.mrf.mxu1 }
 0x190   :  { %v377_v0 = vmax.f32 %v363_v49, 0.0 }
 0x192   :  { %v433_v6 = vmul.f32 %v416_v4, %v377_v0 }
 0x194   :  { %v440_v11 = vadd.f32 %v439_v8, %v433_v6 }
 0x197   :  { %v366_v61 = vpop.f32.mrf.mxu1 }
 0x198   :  { %v378_v3 = vmax.f32 %v366_v61, 0.0 }
 0x19a   :  { %v434_v9 = vmul.f32 %v421_v7, %v378_v3 }
 0x19c   :  { %v441_v14 = vadd.f32 %v440_v11, %v434_v9 }
 0x19f   :  { %v369_v10 = vpop.f32.mrf.mxu1 }
 0x1a0   :  { %v379_v12 = vmax.f32 %v369_v10, 0.0 }
 0x1a2   :  { %v435_v15 = vmul.f32 %v426_v13, %v379_v12 }
 0x1a4   :  { %v442_v16 = vadd.f32 %v441_v14, %v435_v15 }
 0x1a6   :  { %v443_v17 = vrot.slane %v442_v16, 4 }
 0x1a8   :  { %v444_v18 = vadd.f32 %v443_v17, %v442_v16 }
 0x1aa   :  { %v445_v19 = vrot.slane %v444_v18, 2 }
 0x1ac   :  { %v446_v20 = vadd.f32 %v445_v19, %v444_v18 }
 0x1ae   :  { %v447_v21 = vrot.slane %v446_v20, 1 }
 0x1b0   :  { %v448_v23 = vadd.f32 %v447_v21, %v446_v20 }
 0x1b2   :  { %v451_v24 = vadd.f32 %v450_v22, %v448_v23 }
 0x1b4   :  { %v516_v25 = vmul.f32 -1.442695, %v451_v24 }
 0x1b6   :  { %554 = vpow2.f32 %v516_v25 }
 0x1bc   :  { %v555_v26 = vpop.eup %554 }
 0x1bd   :  { %v455_v27 = vadd.f32 1.0, %v555_v26 }
 0x1bf   :  { %556 = vrcp.f32 %v455_v27  ;;  %v467_v31 = vand.u32 2147483648, %v455_v27  ;;  %v465_v33 = vand.u32 2147483647, %v455_v27  ;;  %vm461_vm11 = vweird.f32 %v455_v27 }
 0x1c1   :  { %v468_v35 = vor.u32 1.1754944e-38, %v467_v31  ;;  %vm466_vm13 = vcmp.eq.f32.partialorder %v465_v33, 8.507059e+37 }
 0x1c5   :  { %v557_v28 = vpop.eup %556 }
 0x1c6   :  { %v457_v29 = vmul.f32 %v557_v28, %v455_v27  ;;  %vm462_vm10 = vweird.f32 %v557_v28 }
 0x1c7   :  { %vm463_vm12 = vmor %vm461_vm11, %vm462_vm10 }
 0x1c8   :  { %v458_v30 = vsub.f32 1.0, %v457_v29 }
 0x1ca   :  { %v459_v32 = vmul.f32 %v557_v28, %v458_v30 }
 0x1cc   :  { %v460_v34 = vadd.f32 %v557_v28, %v459_v32 }
 0x1ce   :  { %v464_v36 = vsel %vm463_vm12, %v557_v28, %v460_v34 }
 0x1cf   :  { %v469_v37 = vsel %vm466_vm13, %v468_v35, %v464_v36 }
 0x1d0   :  { %471 = vst [vmem:[%s830_s6] sm:$0x1] %v469_v37 }

</bundles_post_ra>
